<compile_context>
chip_gen: v7x
topology: tpu7x:2x2x1
jax: 0.10.0
libtpu: 0.0.40
codegen_flags: <defaults>
</compile_context>

<pallas_src>
import functools
import math

import jax
import jax.numpy as jnp
from jax.experimental import pallas as pl
from jax.experimental.pallas import tpu as pltpu


def _cdiv(a: int, b: int) -> int:
    return (a + b - 1) // b


def _round_up(x: int, m: int) -> int:
    return ((x + m - 1) // m) * m


def _num_tensorcores_per_chip() -> int:
    """v7x has 2 TensorCores per chip; v5e/v6e have 1."""
    try:
        kind = jax.devices()[0].device_kind.lower()
        if "v7" in kind:
            return 2
    except Exception:
        pass
    return 1


def _vmem_capacity_bytes() -> int:
    try:
        info = pltpu.get_tpu_info()
        cap = getattr(info, "vmem_capacity_bytes", None)
        if cap:
            return int(cap)
    except Exception:
        pass
    return 64 * 1024 * 1024  # conservative (v7x per-core)


def _equal_linear_kernel(*refs, w_scale, has_bias, apply_act,
                         negative_slope, act_scale, multi_k):
    """One (tm, tn) output tile; k (reduction) is the last grid axis."""
    idx = 0
    x_ref = refs[idx]; idx += 1
    wt_ref = refs[idx]; idx += 1
    b_ref = None
    if has_bias:
        b_ref = refs[idx]; idx += 1
    o_ref = refs[idx]; idx += 1
    acc_ref = refs[idx] if multi_k else None

    # Partial product for this k-slab (f32 accumulation on the MXU).
    part = jnp.dot(x_ref[...], wt_ref[...], preferred_element_type=jnp.float32)

    def epilogue(acc):
        # Fold the equalized-lr scale here instead of pre-scaling the weight:
        # x @ (W*s).T == (x @ W.T) * s  (s is a scalar).
        y = acc * w_scale
        if has_bias:
            y = y + b_ref[...]                          # (tm,tn) + (1,tn)
        if apply_act:
            # sqrt(2) * leaky_relu(y, 0.2), scale folded into the select.
            mult = jnp.where(y >= 0.0, act_scale, negative_slope * act_scale)
            y = y * mult
        o_ref[...] = y.astype(o_ref.dtype)

    if multi_k:
        k = pl.program_id(2)

        @pl.when(k == 0)
        def _():
            acc_ref[...] = part          # first slab: write, don't zero+add

        @pl.when(k > 0)
        def _():
            acc_ref[...] += part

        @pl.when(k == pl.num_programs(2) - 1)
        def _():
            epilogue(acc_ref[...])
    else:
        epilogue(part)                   # K fits one tile: no scratch traffic


def _pick_tiles(M, N, K, row_align, vmem_cap):
    """Adaptive (8/16,128)-aligned tiles that minimise padding."""
    tm_cap, tn_cap, tk_cap = 512, 512, 512
    # Large layers on 128-MiB-VMEM chips (v5e/v6e): bigger N/K tiles halve
    # HBM re-reads and grid-step overhead.  v7x (64 MiB) keeps the 512 cap.
    if vmem_cap >= 128 * 1024 * 1024 and N >= 1024 and K >= 1024:
        tn_cap, tk_cap = 1024, 1024

    m_tiles = max(1, _cdiv(M, tm_cap))
    tm = _round_up(_cdiv(M, m_tiles), row_align)
    n_tiles = max(1, _cdiv(N, tn_cap))
    tn = _round_up(_cdiv(N, n_tiles), 128)
    k_tiles = max(1, _cdiv(K, tk_cap))
    tk = _round_up(_cdiv(K, k_tiles), 128)

    # v7x megacore: guarantee >= 2 parallel grid blocks so both TensorCores
    # get work (typical style-MLP case: small M, N = K = 512).
    if _num_tensorcores_per_chip() >= 2 and m_tiles * n_tiles < 2:
        if N > 128:
            n_tiles = 2
            tn = _round_up(_cdiv(N, 2), 128)
        elif M > row_align:
            m_tiles = 2
            tm = _round_up(_cdiv(M, 2), row_align)

    return tm, tn, tk, m_tiles, n_tiles, k_tiles


def prepare_equal_linear_weight(weight):
    """Hoist the (out_ch,in_ch) -> (in_ch,out_ch) transpose out of the
    per-call path; do this once at init and pass the result as `weight_t=`."""
    return jnp.transpose(jnp.asarray(weight))


def equal_linear(x, weight=None, bias=None, *, weight_t=None, lr_mul=1.0,
                 activation=None, negative_slope=0.2, act_scale=math.sqrt(2.0),
                 compute_dtype=None):
    """EqualLinear forward.

    x: (..., in_ch); weight: (out_ch, in_ch) OR weight_t: (in_ch, out_ch)
    (pre-transposed, see prepare_equal_linear_weight); bias: (out_ch,) | None.
    compute_dtype: dtype fed to the MXU (default: x.dtype).  bf16 halves HBM
    traffic and doubles MXU throughput; accumulation stays f32.
    """
    if activation not in ("fused_lrelu", None):
        raise ValueError(f"Wrong activation value in EqualLinear: {activation}")

    if weight_t is None:
        if weight is None:
            raise ValueError("Provide either weight or weight_t.")
        out_ch, in_ch = weight.shape
        wt = jnp.transpose(weight)                  # (K, N): lane-dense output
    else:
        in_ch, out_ch = weight_t.shape
        wt = weight_t

    orig_shape = x.shape
    assert orig_shape[-1] == in_ch
    out_dtype = x.dtype
    cdt = jnp.dtype(compute_dtype) if compute_dtype is not None else jnp.dtype(x.dtype)

    x2d = x.reshape(-1, in_ch)
    M, K = x2d.shape
    N = out_ch

    w_scale = (1.0 / math.sqrt(in_ch)) * lr_mul
    has_bias = bias is not None
    apply_act = activation == "fused_lrelu"

    # bf16 packs along sublanes; keep the M tile 16-aligned in that case.
    row_align = 16 if cdt == jnp.bfloat16 else 8
    vmem_cap = _vmem_capacity_bytes()
    tm, tn, tk, m_tiles, n_tiles, k_tiles = _pick_tiles(M, N, K, row_align, vmem_cap)
    Mp, Np, Kp = tm * m_tiles, tn * n_tiles, tk * k_tiles
    multi_k = k_tiles > 1

    # Zero padding keeps the matmul exact; padded rows/cols are sliced off.
    xp = x2d if (Mp == M and Kp == K) else jnp.pad(x2d, ((0, Mp - M), (0, Kp - K)))
    wtp = wt if (Kp == K and Np == N) else jnp.pad(wt, ((0, Kp - K), (0, Np - N)))
    xp = xp.astype(cdt)
    wtp = wtp.astype(cdt)

    operands = [xp, wtp]
    in_specs = [
        pl.BlockSpec((tm, tk), lambda i, j, k: (i, k)),    # x tile
        pl.BlockSpec((tk, tn), lambda i, j, k: (k, j)),    # W.T tile
    ]
    if has_bias:
        b_eff = bias.astype(jnp.float32) * lr_mul
        bp = jnp.pad(b_eff, (0, Np - N)).reshape(1, Np)
        operands.append(bp)
        in_specs.append(pl.BlockSpec((1, tn), lambda i, j, k: (0, j)))

    scratch_shapes = [pltpu.VMEM((tm, tn), jnp.float32)] if multi_k else []

    in_bytes = cdt.itemsize
    out_bytes = jnp.dtype(out_dtype).itemsize
    # Double-buffered pipeline footprint; raise the scoped VMEM limit only
    # when the large-layer tiles need it (otherwise every generation's
    # default scoped budget already covers it).
    footprint = (2 * tm * tk * in_bytes + 2 * tk * tn * in_bytes
                 + 2 * tm * tn * out_bytes
                 + (tm * tn * 4 if multi_k else 0)
                 + (2 * tn * 4 if has_bias else 0))
    vmem_limit = int(footprint * 1.5) if footprint > 12 * 1024 * 1024 else None

    cost = pl.CostEstimate(
        flops=2 * M * N * K + (4 * M * N if apply_act else 2 * M * N),
        transcendentals=0,
        bytes_accessed=(Mp * Kp + Kp * Np) * in_bytes + Mp * Np * out_bytes
        + (Np * 4 if has_bias else 0),
    )

    kernel = functools.partial(
        _equal_linear_kernel,
        w_scale=w_scale,
        has_bias=has_bias,
        apply_act=apply_act,
        negative_slope=negative_slope,
        act_scale=act_scale,
        multi_k=multi_k,
    )

    out = pl.pallas_call(
        kernel,
        out_shape=jax.ShapeDtypeStruct((Mp, Np), out_dtype),
        grid_spec=pltpu.PrefetchScalarGridSpec(
            num_scalar_prefetch=0,
            grid=(m_tiles, n_tiles, k_tiles),
            in_specs=in_specs,
            out_specs=pl.BlockSpec((tm, tn), lambda i, j, k: (i, j)),
            scratch_shapes=scratch_shapes,
        ),
        compiler_params=pltpu.CompilerParams(
            dimension_semantics=("parallel", "parallel", "arbitrary"),
            vmem_limit_bytes=vmem_limit,
        ),
        cost_estimate=cost,
    )(*operands)

    out = out[:M, :N]
    return out.reshape(orig_shape[:-1] + (N,))


# ----------------------------- reference --------------------------------- #
def _equal_linear_ref(x, weight, bias, lr_mul, activation):
    scale = 1.0 / math.sqrt(weight.shape[1]) * lr_mul
    y = x @ (weight * scale).T
    b = None if bias is None else bias * lr_mul
    if activation == "fused_lrelu":
        y = y + (0.0 if b is None else b)
        y = math.sqrt(2.0) * jnp.where(y >= 0, y, 0.2 * y)
    else:
        if b is not None:
            y = y + b
    return y


if __name__ == "__main__":
    key = jax.random.PRNGKey(0)
    k1, k2, k3, k4, k5 = jax.random.split(key, 5)

    batch, in_ch, out_ch = 8, 32, 32
    x = jax.random.normal(k1, (batch, in_ch), dtype=jnp.float32)

    # Config 1: plain linear path (activation=None), with bias, lr_mul=1.
    w1 = jax.random.normal(k2, (out_ch, in_ch), dtype=jnp.float32)
    b1 = jax.random.normal(k3, (out_ch,), dtype=jnp.float32) * 0.1
    out1 = jax.block_until_ready(equal_linear(x, w1, b1, lr_mul=1.0, activation=None))
    ref1 = _equal_linear_ref(x, w1, b1, 1.0, None)
    assert out1.shape == (batch, out_ch) and out1.dtype == x.dtype
    assert jnp.allclose(out1, ref1, atol=2e-2, rtol=2e-2)

    # Config 2: fused_lrelu path with lr_mul=0.5 and a non-zero bias.
    lr_mul = 0.5
    w2 = jax.random.normal(k4, (out_ch, in_ch), dtype=jnp.float32) / lr_mul
    b2 = jax.random.normal(k5, (out_ch,), dtype=jnp.float32) * 0.2
    out2 = jax.block_until_ready(
        equal_linear(x, w2, b2, lr_mul=lr_mul, activation="fused_lrelu"))
    ref2 = _equal_linear_ref(x, w2, b2, lr_mul, "fused_lrelu")
    assert jnp.allclose(out2, ref2, atol=2e-2, rtol=2e-2)

    # Config 3: no bias (bias operand dropped from the kernel entirely).
    out3 = jax.block_until_ready(equal_linear(x, w1, None, lr_mul=1.0, activation=None))
    ref3 = _equal_linear_ref(x, w1, None, 1.0, None)
    assert jnp.allclose(out3, ref3, atol=2e-2, rtol=2e-2)

    # Config 4: multi-K-tile reduction path (in_ch > 512) + fused_lrelu.
    kk = jax.random.split(k5, 3)
    x4 = jax.random.normal(kk[0], (16, 640), dtype=jnp.float32)
    w4 = jax.random.normal(kk[1], (256, 640), dtype=jnp.float32)
    b4 = jax.random.normal(kk[2], (256,), dtype=jnp.float32) * 0.1
    out4 = jax.block_until_ready(
        equal_linear(x4, w4, b4, lr_mul=1.0, activation="fused_lrelu"))
    ref4 = _equal_linear_ref(x4, w4, b4, 1.0, "fused_lrelu")
    assert jnp.allclose(out4, ref4, atol=2e-2, rtol=2e-2)

    # Config 5: pre-transposed weight (transpose hoisted out of the per-call
    # path) plus the optional bf16 compute path (f32 accumulation kept).
    w1_t = prepare_equal_linear_weight(w1)
    out5 = jax.block_until_ready(
        equal_linear(x, weight_t=w1_t, bias=b1, lr_mul=1.0, activation=None,
                     compute_dtype=jnp.bfloat16))
    assert jnp.allclose(out5, ref1, atol=2e-2, rtol=2e-2)

    print("KERNEL_OK")
</pallas_src>

<mosaic_0001>
module attributes {stable_mosaic.version = 11 : i64} {
  func.func @_equal_linear_kernel(%arg0: i32, %arg1: i32, %arg2: i32, %arg3: memref<8x128xf32, #tpu.memory_space<vmem>>, %arg4: memref<128x128xf32, #tpu.memory_space<vmem>>, %arg5: memref<1x128xf32, #tpu.memory_space<vmem>>, %arg6: memref<8x128xf32, #tpu.memory_space<vmem>>) attributes {dimension_semantics = [#tpu.dimension_semantics<parallel>, #tpu.dimension_semantics<parallel>, #tpu.dimension_semantics<arbitrary>], iteration_bounds = array<i64: 1, 1, 1>, scalar_prefetch = 0 : i64, scratch_operands = 0 : i64, tpu.core_type = #tpu.core_type<tc>, window_params = [{transform_indices = @transform_0, window_bounds = array<i64: 8, 128>}, {transform_indices = @transform_1, window_bounds = array<i64: 128, 128>}, {transform_indices = @transform_2, window_bounds = array<i64: 1, 128>}, {transform_indices = @transform_3, window_bounds = array<i64: 8, 128>}]} {
    %c0 = arith.constant 0 : index
    %c0_0 = arith.constant 0 : index
    %0 = vector.load %arg3[%c0, %c0_0] : memref<8x128xf32, #tpu.memory_space<vmem>>, vector<8x128xf32>
    %c0_1 = arith.constant 0 : index
    %c0_2 = arith.constant 0 : index
    %1 = vector.load %arg4[%c0_1, %c0_2] : memref<128x128xf32, #tpu.memory_space<vmem>>, vector<128x128xf32>
    %cst = arith.constant dense<0.000000e+00> : vector<8x128xf32>
    %2 = tpu.matmul %0, %1, %cst {dimension_numbers = #tpu.dot_dimension_numbers<[1], [0], [0], [1], [0, 0, 1, 1], [], []>} : vector<8x128xf32>, vector<128x128xf32>, vector<8x128xf32> -> vector<8x128xf32>
    %cst_3 = arith.constant 0.176776692 : f32
    %3 = vector.broadcast %cst_3 : f32 to vector<8x128xf32>
    %4 = arith.mulf %2, %3 : vector<8x128xf32>
    %c0_4 = arith.constant 0 : index
    %c0_5 = arith.constant 0 : index
    %5 = vector.load %arg5[%c0_4, %c0_5] : memref<1x128xf32, #tpu.memory_space<vmem>>, vector<1x128xf32>
    %6 = vector.broadcast %5 : vector<1x128xf32> to vector<8x128xf32>
    %7 = arith.addf %4, %6 : vector<8x128xf32>
    %c0_6 = arith.constant 0 : index
    %c0_7 = arith.constant 0 : index
    %8 = vector.load %arg6[%c0_6, %c0_7] : memref<8x128xf32, #tpu.memory_space<vmem>>, vector<8x128xf32>
    tpu.vector_store %arg6[%c0_6, %c0_7], %7 {strides = array<i32>} : memref<8x128xf32, #tpu.memory_space<vmem>>, vector<8x128xf32>,
    return
  }
  func.func @transform_0(%arg0: i32, %arg1: i32, %arg2: i32) -> (i32, i32) {
    %c0_i32 = arith.constant 0 : i32
    return %arg0, %arg2 : i32, i32
  }
  func.func @transform_1(%arg0: i32, %arg1: i32, %arg2: i32) -> (i32, i32) {
    %c0_i32 = arith.constant 0 : i32
    return %arg2, %arg1 : i32, i32
  }
  func.func @transform_2(%arg0: i32, %arg1: i32, %arg2: i32) -> (i32, i32) {
    %c0_i32 = arith.constant 0 : i32
    %c0_i32_0 = arith.constant 0 : i32
    return %c0_i32, %arg1 : i32, i32
  }
  func.func @transform_3(%arg0: i32, %arg1: i32, %arg2: i32) -> (i32, i32) {
    %c0_i32 = arith.constant 0 : i32
    return %arg0, %arg1 : i32, i32
  }
}

</mosaic_0001>

<bundles_post_ra>
// kernel: tpu_custom_call.1
= control target key start
LH: loop header
LB: loop body
LE: loop exit
PB: predicated region body
PF: predicated region fallthrough
CT: control target
= control target key end

     0   :  { %8 = vsyncpa [#allocation3], 0  ;;  %s385_s0 = inlined_call_operand.hbm [shape: f32[8,128], index: 0, kind: input, shape index: {}]   ;;  %s386_s1 = inlined_call_operand.hbm [shape: f32[128,128], index: 1, kind: input, shape index: {}]   ;;  %s387_s2 = inlined_call_operand.vmem [shape: f32[1,128], index: 2, kind: input, shape index: {}]   ;;  %s388_s3 = inlined_call_operand.hbm [shape: f32[8,128], index: 3, kind: output, shape index: {}]  }
   0x1   :  { %9 = vsyncpa [#allocation6], 0 }
   0x2   :  { %10 = vsyncpa [#allocation4], 0  ;;  %s311_s12 = smov [#allocation2]   ;;  %s312_s14 = smov [#allocation5]  }
   0x3   :  { %s17_s13 = sshll.u32 %s311_s12, 4  ;;  %s26_s15 = sshll.u32 %s312_s14, 4  ;;  %s18_s13 = int_to_ptr.vmem [resolvable:$true] %s17_s13  ;;  %s339_s15 = int_to_ptr.vmem [resolvable:$true] %s26_s15 }
   0x4   :  { %s239_s18 = scalar_lea.hbm %s385_s0, 128 }
   0x5   :  { %p240_p0 = scmp.ne.s32.totalorder %s385_s0, %s239_s18  ;;  %p243_p1 = scmp.lt.u32.totalorder %s239_s18, %s385_s0 }
   0x7   :  { %p245_p2 = pnand %p243_p1, %p240_p0 }
   0x9   :  { %248 = shalt.err (!%p245_p2)
}
   0xa   :  { %s249_s23 = scalar_lea.vmem %s18_s13, 128  ;;  %p254_p4 = scmp.lt.s32.totalorder %s18_s13, %s18_s13 }
   0xb   :  { %p250_p3 = scmp.ne.s32.totalorder %s18_s13, %s249_s23  ;;  %p255_p5 = scmp.lt.s32.totalorder %s249_s23, %s249_s23 }
   0xd   :  { %p256_p6 = por %p255_p5, %p254_p4 }
   0xf   :  { %p257_p7 = pnand %p256_p6, %p250_p3 }
  0x11   :  { %260 = shalt.err (!%p257_p7)
}
  0x12   :  { %20 = dma.hbm_to_vmem [thread:$0]  %s385_s0, 128, %s18_s13, [#allocation3]  }
  0x13   :  { %s261_s28 = scalar_lea.hbm %s386_s1, 2048 }
  0x14   :  { %p262_p8 = scmp.ne.s32.totalorder %s386_s1, %s261_s28  ;;  %p265_p9 = scmp.lt.u32.totalorder %s261_s28, %s386_s1 }
  0x16   :  { %p267_p10 = pnand %p265_p9, %p262_p8 }
  0x18   :  { %270 = shalt.err (!%p267_p10)
}
  0x19   :  { %s271_s6 = scalar_lea.vmem %s339_s15, 2048  ;;  %p276_p12 = scmp.lt.s32.totalorder %s339_s15, %s339_s15 }
  0x1a   :  { %p272_p11 = scmp.ne.s32.totalorder %s339_s15, %s271_s6  ;;  %p277_p13 = scmp.lt.s32.totalorder %s271_s6, %s271_s6 }
  0x1c   :  { %p278_p0 = por %p277_p13, %p276_p12 }
  0x1e   :  { %p279_p1 = pnand %p278_p0, %p272_p11 }
  0x20   :  { %282 = shalt.err (!%p279_p1)
}
  0x21   :  { %s313_s0 = smov 128   ;;  %s314_s7 = smov 8  }
  0x22   :  { %32 = dma.hbm_to_vmem [thread:$0]  %s386_s1, 2048, %s339_s15, [#allocation6], %s313_s0, %s313_s0, %s314_s7  }
  0x23   :  { %305 = dma.done.wait [#allocation3], 128  }
  0x24   :  { %306 = vsyncadd [#allocation3], 4294967168 }
  0x25   :  { %307 = dma.done.wait [#allocation6], 2048  }
  0x26   :  { %308 = vsyncadd [#allocation6], 4294965248  ;;  %v315_v0 = vmov 0.0|0.0   ;;  %vm316_vm0 = vmmov 0   ;;  %v317_v1 = vmov 0.0   ;;  %v42_v2 = vld [vmem:[#allocation5] sm:$0xff] }
  0x27   :  { %207 = vmatprep.subr.bf16.mxu0 %v315_v0  ;;  %204 = vmatprep.mubr.msk.f32.mxu0 %vm316_vm0, %v317_v1  ;;  %v43_v3 = vld [vmem:[#allocation5 + $0x8] sm:$0xff]  ;;  %v44_v4 = vld [vmem:[#allocation5 + $0x10] sm:$0xff]  ;;  %v45_v6 = vld [vmem:[#allocation5 + $0x18] sm:$0xff]  ;;  %s318_s11 = smov [#allocation7]  }
  0x28   :  { %v208_v5 = vpack.c.bf16 %v43_v3, %v42_v2  ;;  %v211_v7 = vpack.c.bf16 %v45_v6, %v44_v4  ;;  %v46_v8 = vld [vmem:[#allocation5 + $0x20] sm:$0xff]  ;;  %v47_v9 = vld [vmem:[#allocation5 + $0x28] sm:$0xff]  ;;  %v48_v11 = vld [vmem:[#allocation5 + $0x30] sm:$0xff]  ;;  %s144_s12 = sshll.u32 %s318_s11, 4  ;;  %s145_s12 = int_to_ptr.vmem [resolvable:$true] %s144_s12 }
  0x29   :  { %v214_v10 = vpack.c.bf16 %v47_v9, %v46_v8  ;;  %v49_v12 = vld [vmem:[#allocation5 + $0x38] sm:$0xff]  ;;  %v50_v14 = vld [vmem:[#allocation5 + $0x40] sm:$0xff]  ;;  %v51_v15 = vld [vmem:[#allocation5 + $0x48] sm:$0xff]  ;;  %s283_s13 = scalar_lea.vmem %s145_s12, 128  ;;  %p288_p3 = scmp.lt.s32.totalorder %s145_s12, %s145_s12 }
  0x2a   :  { %209 = vmatpush3.bf16.msra.mxu0 %v208_v5  ;;  %v217_v13 = vpack.c.bf16 %v49_v12, %v48_v11  ;;  %v220_v16 = vpack.c.bf16 %v51_v15, %v50_v14  ;;  %v52_v17 = vld [vmem:[#allocation5 + $0x50] sm:$0xff]  ;;  %v53_v18 = vld [vmem:[#allocation5 + $0x58] sm:$0xff]  ;;  %v54_v20 = vld [vmem:[#allocation5 + $0x60] sm:$0xff]  ;;  %p284_p2 = scmp.ne.s32.totalorder %s145_s12, %s283_s13  ;;  %p289_p4 = scmp.lt.s32.totalorder %s283_s13, %s283_s13 }
  0x2b   :  { %210 = vmatprep.subr.bf16.mxu0 %v315_v0  ;;  %v223_v19 = vpack.c.bf16 %v53_v18, %v52_v17  ;;  %v55_v21 = vld [vmem:[#allocation5 + $0x68] sm:$0xff]  ;;  %v56_v23 = vld [vmem:[#allocation5 + $0x70] sm:$0xff]  ;;  %v57_v24 = vld [vmem:[#allocation5 + $0x78] sm:$0xff] }
  0x2c   :  { %v226_v22 = vpack.c.bf16 %v55_v21, %v54_v20  ;;  %v229_v25 = vpack.c.bf16 %v57_v24, %v56_v23  ;;  %v41_v26 = vld [vmem:[#allocation2] sm:$0xff]  ;;  %p290_p5 = por %p289_p4, %p288_p3 }
  0x2d   :  { %v154_v28 = vld [vmem:[%s387_s2] ss:$0 sm:$0xff] }
  0x2e   :  { %212 = vmatpush3.bf16.msra.mxu0 %v211_v7  ;;  %p291_p6 = pnand %p290_p5, %p284_p2 }
  0x2f   :  { %213 = vmatprep.subr.bf16.mxu0 %v315_v0 }
  0x32   :  { %215 = vmatpush3.bf16.msra.mxu0 %v214_v10 }
  0x33   :  { %216 = vmatprep.subr.bf16.mxu0 %v315_v0 }
  0x36   :  { %218 = vmatpush3.bf16.msra.mxu0 %v217_v13 }
  0x37   :  { %219 = vmatprep.subr.bf16.mxu0 %v315_v0 }
  0x3a   :  { %221 = vmatpush3.bf16.msra.mxu0 %v220_v16 }
  0x3b   :  { %222 = vmatprep.subr.bf16.mxu0 %v315_v0 }
  0x3e   :  { %224 = vmatpush3.bf16.msra.mxu0 %v223_v19 }
  0x3f   :  { %225 = vmatprep.subr.bf16.mxu0 %v315_v0 }
  0x42   :  { %227 = vmatpush3.bf16.msra.mxu0 %v226_v22 }
  0x43   :  { %228 = vmatprep.subr.bf16.mxu0 %v315_v0 }
  0x46   :  { %230 = vmatpush3.bf16.msra.mxu0 %v229_v25 }
  0x49   :  { %205 = vmatmul.mubr.f32.vlgmr.msra.gmra.mrb[0].mxu0 %v41_v26 }
 0x11c   :  { %v124_v27 = vpop.f32.mrb[0].mxu0 }
 0x11d   :  { %v128_v29 = vmul.f32 0.17677669, %v124_v27  ;;  %v206_v30 = vpop.f32.mrb[1].mxu0 }
 0x11f   :  { %v136_v31 = vadd.f32 %v154_v28, %v128_v29 }
 0x121   :  { %137 = vst [vmem:[#allocation7] sm:$0xff] %v136_v31 }
 0x122   :  { %294 = shalt.err (!%p291_p6)
}
 0x123   :  { %s295_s16 = scalar_lea.hbm %s388_s3, 128 }
 0x124   :  { %p296_p7 = scmp.ne.s32.totalorder %s388_s3, %s295_s16  ;;  %p299_p8 = scmp.lt.u32.totalorder %s295_s16, %s388_s3 }
 0x126   :  { %p301_p9 = pnand %p299_p8, %p296_p7 }
 0x128   :  { %304 = shalt.err (!%p301_p9)
}
 0x129   :  { %147 = dma.vmem_to_hbm [thread:$0]  %s145_s12, 128, %s388_s3, [#allocation4]  }
 0x12a   :  { %309 = dma.done.wait [#allocation4], 128  }
 0x12b   :  { %310 = vsyncadd [#allocation4], 4294967168 }
 0x12c   :  { %151 = vsyncpa [#allocation3], 1 }
 0x12d   :  { %152 = vsyncpa [#allocation6], 1 }
 0x12e   :  { %153 = vsyncpa [#allocation4], 1 }

</bundles_post_ra>
